<compile_context>
chip_gen: v7x
topology: tpu7x:2x2x1
jax: 0.10.0
libtpu: 0.0.40
codegen_flags: <defaults>
</compile_context>

<pallas_src>
import functools

import jax
import jax.numpy as jnp
from jax import lax
from jax.experimental import pallas as pl
from jax.experimental.pallas import tpu as pltpu


# ----------------------------------------------------------------------------
# Fused kernel: qkv matmul -> per-(window, head) attention -> output projection
# ----------------------------------------------------------------------------
def fused_window_attention_kernel(x_ref, wqkv_ref, bqkv_ref, wproj_ref, bproj_ref,
                                  o_ref, attn_ref, *, num_heads, scale):
    # x_ref    : (WB, N, C)        -- WB windows per grid step
    # wqkv_ref : (C, 3C), bqkv_ref: (1, 3C)
    # wproj_ref: (C, C),  bproj_ref: (1, C)
    # o_ref    : (WB, N, C)
    # attn_ref : (WB, H, N, N)
    WB, N, C = x_ref.shape
    D = C // num_heads

    # qkv projection for all windows in this block at once: M = WB*N rows.
    x2 = x_ref[...].reshape(WB * N, C)
    qkv = jnp.dot(x2, wqkv_ref[...],
                  preferred_element_type=jnp.float32) + bqkv_ref[...]   # (WB*N, 3C)

    rows = []
    for w in range(WB):                       # static unroll over windows in tile
        base = w * N
        head_ctx = []
        for h in range(num_heads):            # static unroll over heads
            q = qkv[base:base + N,           h * D:(h + 1) * D]          # (N, D)
            k = qkv[base:base + N, C       + h * D:C       + (h + 1) * D]
            v = qkv[base:base + N, 2 * C   + h * D:2 * C   + (h + 1) * D]

            # q @ k^T without an explicit transpose: contract the D axis of both.
            s = lax.dot_general(q, k, (((1,), (1,)), ((), ())),
                                preferred_element_type=jnp.float32) * scale   # (N, N)
            s = s - jnp.max(s, axis=-1, keepdims=True)
            p = jnp.exp(s)
            p = p * pl.reciprocal(jnp.sum(p, axis=-1, keepdims=True), approx=True)

            attn_ref[w, h] = p.astype(attn_ref.dtype)
            head_ctx.append(jnp.dot(p, v, preferred_element_type=jnp.float32))  # (N, D)
        rows.append(jnp.concatenate(head_ctx, axis=-1))    # (N, C)

    ctx = jnp.concatenate(rows, axis=0)                    # (WB*N, C)

    out = jnp.dot(ctx, wproj_ref[...],
                  preferred_element_type=jnp.float32) + bproj_ref[...]
    o_ref[...] = out.reshape(WB, N, C).astype(o_ref.dtype)


def window_attention_forward(x, params, num_heads, block_b=None):
    """x: (B, N, C). Returns (out (B, N, C), attn_map (B, H, N, N))."""
    B, N, C = x.shape
    assert C % num_heads == 0
    # The in-kernel softmax materializes full (N, N) scores per head: only
    # intended for genuinely window-sized N.
    assert N <= 1024, "window token count too large for the fused kernel"
    D = C // num_heads
    scale = D ** (-0.5)

    if block_b is None:
        # Pack several windows per grid step so the qkv/proj matmuls give the
        # MXU a taller M (~256 rows), while everything stays VMEM-resident.
        target = max(1, 256 // max(N, 1))
        block_b = 1
        for cand in range(min(B, target), 0, -1):
            if B % cand == 0:
                block_b = cand
                break
    assert B % block_b == 0
    grid = (B // block_b,)

    kern = functools.partial(fused_window_attention_kernel,
                             num_heads=num_heads, scale=scale)

    out, attn = pl.pallas_call(
        kern,
        out_shape=(
            jax.ShapeDtypeStruct((B, N, C), x.dtype),
            jax.ShapeDtypeStruct((B, num_heads, N, N), jnp.float32),
        ),
        grid_spec=pltpu.PrefetchScalarGridSpec(
            num_scalar_prefetch=0,
            grid=grid,
            in_specs=[
                pl.BlockSpec((block_b, N, C), lambda i: (i, 0, 0)),
                # Constant index_map -> weights/biases stay resident in VMEM.
                pl.BlockSpec((C, 3 * C), lambda i: (0, 0)),
                pl.BlockSpec((1, 3 * C), lambda i: (0, 0)),
                pl.BlockSpec((C, C), lambda i: (0, 0)),
                pl.BlockSpec((1, C), lambda i: (0, 0)),
            ],
            out_specs=[
                pl.BlockSpec((block_b, N, C), lambda i: (i, 0, 0)),
                pl.BlockSpec((block_b, num_heads, N, N), lambda i: (i, 0, 0, 0)),
            ],
        ),
        compiler_params=pltpu.CompilerParams(
            dimension_semantics=("parallel",)),
    )(x,
      params["w_qkv"], params["b_qkv"].reshape(1, 3 * C),
      params["w_proj"], params["b_proj"].reshape(1, C))
    return out, attn


# ----------------------------------------------------------------------------
# Pure-JAX reference for correctness checking.
# ----------------------------------------------------------------------------
def window_attention_ref(x, params, num_heads):
    B, N, C = x.shape
    D = C // num_heads
    scale = D ** (-0.5)
    qkv = x @ params["w_qkv"] + params["b_qkv"]
    qkv = qkv.reshape(B, N, 3, num_heads, D).transpose(2, 0, 3, 1, 4)
    q, k, v = qkv[0], qkv[1], qkv[2]
    attn = (q @ jnp.swapaxes(k, -2, -1)) * scale
    attn = jax.nn.softmax(attn, axis=-1)
    out = attn @ v
    out = out.transpose(0, 2, 1, 3).reshape(B, N, C)
    return out @ params["w_proj"] + params["b_proj"], attn


if __name__ == "__main__":
    B, N, C, H = 2, 8, 32, 4          # batch(windows), tokens, dim, heads
    key = jax.random.PRNGKey(0)
    kx, kw1, kb1, kw2, kb2 = jax.random.split(key, 5)

    x = jax.random.normal(kx, (B, N, C), dtype=jnp.float32)

    # Deterministic synthetic parameters (nn.Linear shapes: qkv C->3C, proj C->C),
    # stored as (in, out) so the kernel computes x @ W + b directly.
    params = {
        "w_qkv": jax.random.normal(kw1, (C, 3 * C), dtype=jnp.float32) * 0.05,
        "b_qkv": jax.random.normal(kb1, (3 * C,), dtype=jnp.float32) * 0.05,
        "w_proj": jax.random.normal(kw2, (C, C), dtype=jnp.float32) * 0.05,
        "b_proj": jax.random.normal(kb2, (C,), dtype=jnp.float32) * 0.05,
    }

    out, attn_map = window_attention_forward(x, params, H)
    out = jax.block_until_ready(out)
    attn_map = jax.block_until_ready(attn_map)

    ref_out, ref_attn = window_attention_ref(x, params, H)
    assert out.shape == (B, N, C) and attn_map.shape == (B, H, N, N)
    # Tolerances account for pl.reciprocal(approx=True) in the softmax denom.
    assert jnp.allclose(out, ref_out, atol=2e-3, rtol=2e-3)
    assert jnp.allclose(attn_map, ref_attn, atol=2e-3, rtol=2e-3)

    # TODO(synk): PyTorch's `self.attn_map = attn.detach().cpu()` host-side cache
    # has no in-kernel equivalent; the attention map is returned as a second output.

    print("KERNEL_OK")
</pallas_src>

<mosaic_0001>
module attributes {stable_mosaic.version = 11 : i64} {
  func.func @fused_window_attention_kernel(%arg0: i32, %arg1: memref<2x8x32xf32, #tpu.memory_space<vmem>>, %arg2: memref<32x96xf32, #tpu.memory_space<vmem>>, %arg3: memref<1x96xf32, #tpu.memory_space<vmem>>, %arg4: memref<32x32xf32, #tpu.memory_space<vmem>>, %arg5: memref<1x32xf32, #tpu.memory_space<vmem>>, %arg6: memref<2x8x32xf32, #tpu.memory_space<vmem>>, %arg7: memref<2x4x8x8xf32, #tpu.memory_space<vmem>>) attributes {dimension_semantics = [#tpu.dimension_semantics<parallel>], iteration_bounds = array<i64: 1>, scalar_prefetch = 0 : i64, scratch_operands = 0 : i64, tpu.core_type = #tpu.core_type<tc>, window_params = [{transform_indices = @transform_0, window_bounds = array<i64: 2, 8, 32>}, {pipeline_mode = #tpu.pipeline_mode<synchronous>, transform_indices = @transform_1, window_bounds = array<i64: 32, 96>}, {pipeline_mode = #tpu.pipeline_mode<synchronous>, transform_indices = @transform_2, window_bounds = array<i64: 1, 96>}, {pipeline_mode = #tpu.pipeline_mode<synchronous>, transform_indices = @transform_3, window_bounds = array<i64: 32, 32>}, {pipeline_mode = #tpu.pipeline_mode<synchronous>, transform_indices = @transform_4, window_bounds = array<i64: 1, 32>}, {transform_indices = @transform_5, window_bounds = array<i64: 2, 8, 32>}, {transform_indices = @transform_6, window_bounds = array<i64: 2, 4, 8, 8>}]} {
    %c0 = arith.constant 0 : index
    %c0_0 = arith.constant 0 : index
    %c0_1 = arith.constant 0 : index
    %0 = vector.load %arg1[%c0, %c0_0, %c0_1] : memref<2x8x32xf32, #tpu.memory_space<vmem>>, vector<2x8x32xf32>
    %1 = vector.shape_cast %0 : vector<2x8x32xf32> to vector<16x32xf32>
    %c0_2 = arith.constant 0 : index
    %c0_3 = arith.constant 0 : index
    %2 = vector.load %arg2[%c0_2, %c0_3] : memref<32x96xf32, #tpu.memory_space<vmem>>, vector<32x96xf32>
    %cst = arith.constant dense<0.000000e+00> : vector<16x96xf32>
    %3 = tpu.matmul %1, %2, %cst {dimension_numbers = #tpu.dot_dimension_numbers<[1], [0], [0], [1], [0, 0, 1, 1], [], []>} : vector<16x32xf32>, vector<32x96xf32>, vector<16x96xf32> -> vector<16x96xf32>
    %c0_4 = arith.constant 0 : index
    %c0_5 = arith.constant 0 : index
    %4 = vector.load %arg3[%c0_4, %c0_5] : memref<1x96xf32, #tpu.memory_space<vmem>>, vector<1x96xf32>
    %5 = vector.broadcast %4 : vector<1x96xf32> to vector<16x96xf32>
    %6 = arith.addf %3, %5 : vector<16x96xf32>
    %7 = vector.extract_strided_slice %6 {offsets = [0, 0], sizes = [8, 8], strides = [1, 1]} : vector<16x96xf32> to vector<8x8xf32>
    %8 = vector.extract_strided_slice %6 {offsets = [0, 32], sizes = [8, 8], strides = [1, 1]} : vector<16x96xf32> to vector<8x8xf32>
    %9 = vector.extract_strided_slice %6 {offsets = [0, 64], sizes = [8, 8], strides = [1, 1]} : vector<16x96xf32> to vector<8x8xf32>
    %cst_6 = arith.constant dense<0.000000e+00> : vector<8x8xf32>
    %10 = tpu.matmul %7, %8, %cst_6 {dimension_numbers = #tpu.dot_dimension_numbers<[1], [1], [0], [0], [0, 0, 1, 0], [], []>} : vector<8x8xf32>, vector<8x8xf32>, vector<8x8xf32> -> vector<8x8xf32>
    %cst_7 = arith.constant 0.353553385 : f32
    %11 = vector.broadcast %cst_7 : f32 to vector<8x8xf32>
    %12 = arith.mulf %10, %11 : vector<8x8xf32>
    %cst_8 = arith.constant dense<0xFF800000> : vector<8xf32>
    %13 = vector.multi_reduction <maximumf>, %12, %cst_8 [1] : vector<8x8xf32> to vector<8xf32>
    %14 = vector.shape_cast %13 : vector<8xf32> to vector<8x1xf32>
    %15 = vector.broadcast %14 : vector<8x1xf32> to vector<8x8xf32>
    %16 = arith.subf %12, %15 : vector<8x8xf32>
    %17 = math.exp %16 : vector<8x8xf32>
    %cst_9 = arith.constant dense<0.000000e+00> : vector<8xf32>
    %18 = vector.multi_reduction <add>, %17, %cst_9 [1] : vector<8x8xf32> to vector<8xf32>
    %19 = vector.shape_cast %18 : vector<8xf32> to vector<8x1xf32>
    %20 = tpu.reciprocal %19 {approx = true} : vector<8x1xf32> -> vector<8x1xf32>
    %21 = vector.broadcast %20 : vector<8x1xf32> to vector<8x8xf32>
    %22 = arith.mulf %17, %21 : vector<8x8xf32>
    %c0_10 = arith.constant 0 : index
    %c0_11 = arith.constant 0 : index
    %c0_12 = arith.constant 0 : index
    %c0_13 = arith.constant 0 : index
    %23 = vector.load %arg7[%c0_10, %c0_11, %c0_12, %c0_13] : memref<2x4x8x8xf32, #tpu.memory_space<vmem>>, vector<1x1x8x8xf32>
    %24 = vector.shape_cast %23 : vector<1x1x8x8xf32> to vector<8x8xf32>
    %25 = vector.shape_cast %22 : vector<8x8xf32> to vector<1x1x8x8xf32>
    tpu.vector_store %arg7[%c0_10, %c0_11, %c0_12, %c0_13], %25 {strides = array<i32>} : memref<2x4x8x8xf32, #tpu.memory_space<vmem>>, vector<1x1x8x8xf32>,
    %cst_14 = arith.constant dense<0.000000e+00> : vector<8x8xf32>
    %26 = tpu.matmul %22, %9, %cst_14 {dimension_numbers = #tpu.dot_dimension_numbers<[1], [0], [0], [1], [0, 0, 1, 1], [], []>} : vector<8x8xf32>, vector<8x8xf32>, vector<8x8xf32> -> vector<8x8xf32>
    %27 = vector.extract_strided_slice %6 {offsets = [0, 8], sizes = [8, 8], strides = [1, 1]} : vector<16x96xf32> to vector<8x8xf32>
    %28 = vector.extract_strided_slice %6 {offsets = [0, 40], sizes = [8, 8], strides = [1, 1]} : vector<16x96xf32> to vector<8x8xf32>
    %29 = vector.extract_strided_slice %6 {offsets = [0, 72], sizes = [8, 8], strides = [1, 1]} : vector<16x96xf32> to vector<8x8xf32>
    %cst_15 = arith.constant dense<0.000000e+00> : vector<8x8xf32>
    %30 = tpu.matmul %27, %28, %cst_15 {dimension_numbers = #tpu.dot_dimension_numbers<[1], [1], [0], [0], [0, 0, 1, 0], [], []>} : vector<8x8xf32>, vector<8x8xf32>, vector<8x8xf32> -> vector<8x8xf32>
    %cst_16 = arith.constant 0.353553385 : f32
    %31 = vector.broadcast %cst_16 : f32 to vector<8x8xf32>
    %32 = arith.mulf %30, %31 : vector<8x8xf32>
    %cst_17 = arith.constant dense<0xFF800000> : vector<8xf32>
    %33 = vector.multi_reduction <maximumf>, %32, %cst_17 [1] : vector<8x8xf32> to vector<8xf32>
    %34 = vector.shape_cast %33 : vector<8xf32> to vector<8x1xf32>
    %35 = vector.broadcast %34 : vector<8x1xf32> to vector<8x8xf32>
    %36 = arith.subf %32, %35 : vector<8x8xf32>
    %37 = math.exp %36 : vector<8x8xf32>
    %cst_18 = arith.constant dense<0.000000e+00> : vector<8xf32>
    %38 = vector.multi_reduction <add>, %37, %cst_18 [1] : vector<8x8xf32> to vector<8xf32>
    %39 = vector.shape_cast %38 : vector<8xf32> to vector<8x1xf32>
    %40 = tpu.reciprocal %39 {approx = true} : vector<8x1xf32> -> vector<8x1xf32>
    %41 = vector.broadcast %40 : vector<8x1xf32> to vector<8x8xf32>
    %42 = arith.mulf %37, %41 : vector<8x8xf32>
    %c0_19 = arith.constant 0 : index
    %c1 = arith.constant 1 : index
    %c0_20 = arith.constant 0 : index
    %c0_21 = arith.constant 0 : index
    %43 = vector.load %arg7[%c0_19, %c1, %c0_20, %c0_21] : memref<2x4x8x8xf32, #tpu.memory_space<vmem>>, vector<1x1x8x8xf32>
    %44 = vector.shape_cast %43 : vector<1x1x8x8xf32> to vector<8x8xf32>
    %45 = vector.shape_cast %42 : vector<8x8xf32> to vector<1x1x8x8xf32>
    tpu.vector_store %arg7[%c0_19, %c1, %c0_20, %c0_21], %45 {strides = array<i32>} : memref<2x4x8x8xf32, #tpu.memory_space<vmem>>, vector<1x1x8x8xf32>,
    %cst_22 = arith.constant dense<0.000000e+00> : vector<8x8xf32>
    %46 = tpu.matmul %42, %29, %cst_22 {dimension_numbers = #tpu.dot_dimension_numbers<[1], [0], [0], [1], [0, 0, 1, 1], [], []>} : vector<8x8xf32>, vector<8x8xf32>, vector<8x8xf32> -> vector<8x8xf32>
    %47 = vector.extract_strided_slice %6 {offsets = [0, 16], sizes = [8, 8], strides = [1, 1]} : vector<16x96xf32> to vector<8x8xf32>
    %48 = vector.extract_strided_slice %6 {offsets = [0, 48], sizes = [8, 8], strides = [1, 1]} : vector<16x96xf32> to vector<8x8xf32>
    %49 = vector.extract_strided_slice %6 {offsets = [0, 80], sizes = [8, 8], strides = [1, 1]} : vector<16x96xf32> to vector<8x8xf32>
    %cst_23 = arith.constant dense<0.000000e+00> : vector<8x8xf32>
    %50 = tpu.matmul %47, %48, %cst_23 {dimension_numbers = #tpu.dot_dimension_numbers<[1], [1], [0], [0], [0, 0, 1, 0], [], []>} : vector<8x8xf32>, vector<8x8xf32>, vector<8x8xf32> -> vector<8x8xf32>
    %cst_24 = arith.constant 0.353553385 : f32
    %51 = vector.broadcast %cst_24 : f32 to vector<8x8xf32>
    %52 = arith.mulf %50, %51 : vector<8x8xf32>
    %cst_25 = arith.constant dense<0xFF800000> : vector<8xf32>
    %53 = vector.multi_reduction <maximumf>, %52, %cst_25 [1] : vector<8x8xf32> to vector<8xf32>
    %54 = vector.shape_cast %53 : vector<8xf32> to vector<8x1xf32>
    %55 = vector.broadcast %54 : vector<8x1xf32> to vector<8x8xf32>
    %56 = arith.subf %52, %55 : vector<8x8xf32>
    %57 = math.exp %56 : vector<8x8xf32>
    %cst_26 = arith.constant dense<0.000000e+00> : vector<8xf32>
    %58 = vector.multi_reduction <add>, %57, %cst_26 [1] : vector<8x8xf32> to vector<8xf32>
    %59 = vector.shape_cast %58 : vector<8xf32> to vector<8x1xf32>
    %60 = tpu.reciprocal %59 {approx = true} : vector<8x1xf32> -> vector<8x1xf32>
    %61 = vector.broadcast %60 : vector<8x1xf32> to vector<8x8xf32>
    %62 = arith.mulf %57, %61 : vector<8x8xf32>
    %c0_27 = arith.constant 0 : index
    %c2 = arith.constant 2 : index
    %c0_28 = arith.constant 0 : index
    %c0_29 = arith.constant 0 : index
    %63 = vector.load %arg7[%c0_27, %c2, %c0_28, %c0_29] : memref<2x4x8x8xf32, #tpu.memory_space<vmem>>, vector<1x1x8x8xf32>
    %64 = vector.shape_cast %63 : vector<1x1x8x8xf32> to vector<8x8xf32>
    %65 = vector.shape_cast %62 : vector<8x8xf32> to vector<1x1x8x8xf32>
    tpu.vector_store %arg7[%c0_27, %c2, %c0_28, %c0_29], %65 {strides = array<i32>} : memref<2x4x8x8xf32, #tpu.memory_space<vmem>>, vector<1x1x8x8xf32>,
    %cst_30 = arith.constant dense<0.000000e+00> : vector<8x8xf32>
    %66 = tpu.matmul %62, %49, %cst_30 {dimension_numbers = #tpu.dot_dimension_numbers<[1], [0], [0], [1], [0, 0, 1, 1], [], []>} : vector<8x8xf32>, vector<8x8xf32>, vector<8x8xf32> -> vector<8x8xf32>
    %67 = vector.extract_strided_slice %6 {offsets = [0, 24], sizes = [8, 8], strides = [1, 1]} : vector<16x96xf32> to vector<8x8xf32>
    %68 = vector.extract_strided_slice %6 {offsets = [0, 56], sizes = [8, 8], strides = [1, 1]} : vector<16x96xf32> to vector<8x8xf32>
    %69 = vector.extract_strided_slice %6 {offsets = [0, 88], sizes = [8, 8], strides = [1, 1]} : vector<16x96xf32> to vector<8x8xf32>
    %cst_31 = arith.constant dense<0.000000e+00> : vector<8x8xf32>
    %70 = tpu.matmul %67, %68, %cst_31 {dimension_numbers = #tpu.dot_dimension_numbers<[1], [1], [0], [0], [0, 0, 1, 0], [], []>} : vector<8x8xf32>, vector<8x8xf32>, vector<8x8xf32> -> vector<8x8xf32>
    %cst_32 = arith.constant 0.353553385 : f32
    %71 = vector.broadcast %cst_32 : f32 to vector<8x8xf32>
    %72 = arith.mulf %70, %71 : vector<8x8xf32>
    %cst_33 = arith.constant dense<0xFF800000> : vector<8xf32>
    %73 = vector.multi_reduction <maximumf>, %72, %cst_33 [1] : vector<8x8xf32> to vector<8xf32>
    %74 = vector.shape_cast %73 : vector<8xf32> to vector<8x1xf32>
    %75 = vector.broadcast %74 : vector<8x1xf32> to vector<8x8xf32>
    %76 = arith.subf %72, %75 : vector<8x8xf32>
    %77 = math.exp %76 : vector<8x8xf32>
    %cst_34 = arith.constant dense<0.000000e+00> : vector<8xf32>
    %78 = vector.multi_reduction <add>, %77, %cst_34 [1] : vector<8x8xf32> to vector<8xf32>
    %79 = vector.shape_cast %78 : vector<8xf32> to vector<8x1xf32>
    %80 = tpu.reciprocal %79 {approx = true} : vector<8x1xf32> -> vector<8x1xf32>
    %81 = vector.broadcast %80 : vector<8x1xf32> to vector<8x8xf32>
    %82 = arith.mulf %77, %81 : vector<8x8xf32>
    %c0_35 = arith.constant 0 : index
    %c3 = arith.constant 3 : index
    %c0_36 = arith.constant 0 : index
    %c0_37 = arith.constant 0 : index
    %83 = vector.load %arg7[%c0_35, %c3, %c0_36, %c0_37] : memref<2x4x8x8xf32, #tpu.memory_space<vmem>>, vector<1x1x8x8xf32>
    %84 = vector.shape_cast %83 : vector<1x1x8x8xf32> to vector<8x8xf32>
    %85 = vector.shape_cast %82 : vector<8x8xf32> to vector<1x1x8x8xf32>
    tpu.vector_store %arg7[%c0_35, %c3, %c0_36, %c0_37], %85 {strides = array<i32>} : memref<2x4x8x8xf32, #tpu.memory_space<vmem>>, vector<1x1x8x8xf32>,
    %cst_38 = arith.constant dense<0.000000e+00> : vector<8x8xf32>
    %86 = tpu.matmul %82, %69, %cst_38 {dimension_numbers = #tpu.dot_dimension_numbers<[1], [0], [0], [1], [0, 0, 1, 1], [], []>} : vector<8x8xf32>, vector<8x8xf32>, vector<8x8xf32> -> vector<8x8xf32>
    %87 = tpu.concatenate %26, %46, %66, %86 in 1 : vector<8x8xf32>, vector<8x8xf32>, vector<8x8xf32>, vector<8x8xf32> -> vector<8x32xf32>
    %88 = vector.extract_strided_slice %6 {offsets = [8, 0], sizes = [8, 8], strides = [1, 1]} : vector<16x96xf32> to vector<8x8xf32>
    %89 = vector.extract_strided_slice %6 {offsets = [8, 32], sizes = [8, 8], strides = [1, 1]} : vector<16x96xf32> to vector<8x8xf32>
    %90 = vector.extract_strided_slice %6 {offsets = [8, 64], sizes = [8, 8], strides = [1, 1]} : vector<16x96xf32> to vector<8x8xf32>
    %cst_39 = arith.constant dense<0.000000e+00> : vector<8x8xf32>
    %91 = tpu.matmul %88, %89, %cst_39 {dimension_numbers = #tpu.dot_dimension_numbers<[1], [1], [0], [0], [0, 0, 1, 0], [], []>} : vector<8x8xf32>, vector<8x8xf32>, vector<8x8xf32> -> vector<8x8xf32>
    %cst_40 = arith.constant 0.353553385 : f32
    %92 = vector.broadcast %cst_40 : f32 to vector<8x8xf32>
    %93 = arith.mulf %91, %92 : vector<8x8xf32>
    %cst_41 = arith.constant dense<0xFF800000> : vector<8xf32>
    %94 = vector.multi_reduction <maximumf>, %93, %cst_41 [1] : vector<8x8xf32> to vector<8xf32>
    %95 = vector.shape_cast %94 : vector<8xf32> to vector<8x1xf32>
    %96 = vector.broadcast %95 : vector<8x1xf32> to vector<8x8xf32>
    %97 = arith.subf %93, %96 : vector<8x8xf32>
    %98 = math.exp %97 : vector<8x8xf32>
    %cst_42 = arith.constant dense<0.000000e+00> : vector<8xf32>
    %99 = vector.multi_reduction <add>, %98, %cst_42 [1] : vector<8x8xf32> to vector<8xf32>
    %100 = vector.shape_cast %99 : vector<8xf32> to vector<8x1xf32>
    %101 = tpu.reciprocal %100 {approx = true} : vector<8x1xf32> -> vector<8x1xf32>
    %102 = vector.broadcast %101 : vector<8x1xf32> to vector<8x8xf32>
    %103 = arith.mulf %98, %102 : vector<8x8xf32>
    %c1_43 = arith.constant 1 : index
    %c0_44 = arith.constant 0 : index
    %c0_45 = arith.constant 0 : index
    %c0_46 = arith.constant 0 : index
    %104 = vector.load %arg7[%c1_43, %c0_44, %c0_45, %c0_46] : memref<2x4x8x8xf32, #tpu.memory_space<vmem>>, vector<1x1x8x8xf32>
    %105 = vector.shape_cast %104 : vector<1x1x8x8xf32> to vector<8x8xf32>
    %106 = vector.shape_cast %103 : vector<8x8xf32> to vector<1x1x8x8xf32>
    tpu.vector_store %arg7[%c1_43, %c0_44, %c0_45, %c0_46], %106 {strides = array<i32>} : memref<2x4x8x8xf32, #tpu.memory_space<vmem>>, vector<1x1x8x8xf32>,
    %cst_47 = arith.constant dense<0.000000e+00> : vector<8x8xf32>
    %107 = tpu.matmul %103, %90, %cst_47 {dimension_numbers = #tpu.dot_dimension_numbers<[1], [0], [0], [1], [0, 0, 1, 1], [], []>} : vector<8x8xf32>, vector<8x8xf32>, vector<8x8xf32> -> vector<8x8xf32>
    %108 = vector.extract_strided_slice %6 {offsets = [8, 8], sizes = [8, 8], strides = [1, 1]} : vector<16x96xf32> to vector<8x8xf32>
    %109 = vector.extract_strided_slice %6 {offsets = [8, 40], sizes = [8, 8], strides = [1, 1]} : vector<16x96xf32> to vector<8x8xf32>
    %110 = vector.extract_strided_slice %6 {offsets = [8, 72], sizes = [8, 8], strides = [1, 1]} : vector<16x96xf32> to vector<8x8xf32>
    %cst_48 = arith.constant dense<0.000000e+00> : vector<8x8xf32>
    %111 = tpu.matmul %108, %109, %cst_48 {dimension_numbers = #tpu.dot_dimension_numbers<[1], [1], [0], [0], [0, 0, 1, 0], [], []>} : vector<8x8xf32>, vector<8x8xf32>, vector<8x8xf32> -> vector<8x8xf32>
    %cst_49 = arith.constant 0.353553385 : f32
    %112 = vector.broadcast %cst_49 : f32 to vector<8x8xf32>
    %113 = arith.mulf %111, %112 : vector<8x8xf32>
    %cst_50 = arith.constant dense<0xFF800000> : vector<8xf32>
    %114 = vector.multi_reduction <maximumf>, %113, %cst_50 [1] : vector<8x8xf32> to vector<8xf32>
    %115 = vector.shape_cast %114 : vector<8xf32> to vector<8x1xf32>
    %116 = vector.broadcast %115 : vector<8x1xf32> to vector<8x8xf32>
    %117 = arith.subf %113, %116 : vector<8x8xf32>
    %118 = math.exp %117 : vector<8x8xf32>
    %cst_51 = arith.constant dense<0.000000e+00> : vector<8xf32>
    %119 = vector.multi_reduction <add>, %118, %cst_51 [1] : vector<8x8xf32> to vector<8xf32>
    %120 = vector.shape_cast %119 : vector<8xf32> to vector<8x1xf32>
    %121 = tpu.reciprocal %120 {approx = true} : vector<8x1xf32> -> vector<8x1xf32>
    %122 = vector.broadcast %121 : vector<8x1xf32> to vector<8x8xf32>
    %123 = arith.mulf %118, %122 : vector<8x8xf32>
    %c1_52 = arith.constant 1 : index
    %c1_53 = arith.constant 1 : index
    %c0_54 = arith.constant 0 : index
    %c0_55 = arith.constant 0 : index
    %124 = vector.load %arg7[%c1_52, %c1_53, %c0_54, %c0_55] : memref<2x4x8x8xf32, #tpu.memory_space<vmem>>, vector<1x1x8x8xf32>
    %125 = vector.shape_cast %124 : vector<1x1x8x8xf32> to vector<8x8xf32>
    %126 = vector.shape_cast %123 : vector<8x8xf32> to vector<1x1x8x8xf32>
    tpu.vector_store %arg7[%c1_52, %c1_53, %c0_54, %c0_55], %126 {strides = array<i32>} : memref<2x4x8x8xf32, #tpu.memory_space<vmem>>, vector<1x1x8x8xf32>,
    %cst_56 = arith.constant dense<0.000000e+00> : vector<8x8xf32>
    %127 = tpu.matmul %123, %110, %cst_56 {dimension_numbers = #tpu.dot_dimension_numbers<[1], [0], [0], [1], [0, 0, 1, 1], [], []>} : vector<8x8xf32>, vector<8x8xf32>, vector<8x8xf32> -> vector<8x8xf32>
    %128 = vector.extract_strided_slice %6 {offsets = [8, 16], sizes = [8, 8], strides = [1, 1]} : vector<16x96xf32> to vector<8x8xf32>
    %129 = vector.extract_strided_slice %6 {offsets = [8, 48], sizes = [8, 8], strides = [1, 1]} : vector<16x96xf32> to vector<8x8xf32>
    %130 = vector.extract_strided_slice %6 {offsets = [8, 80], sizes = [8, 8], strides = [1, 1]} : vector<16x96xf32> to vector<8x8xf32>
    %cst_57 = arith.constant dense<0.000000e+00> : vector<8x8xf32>
    %131 = tpu.matmul %128, %129, %cst_57 {dimension_numbers = #tpu.dot_dimension_numbers<[1], [1], [0], [0], [0, 0, 1, 0], [], []>} : vector<8x8xf32>, vector<8x8xf32>, vector<8x8xf32> -> vector<8x8xf32>
    %cst_58 = arith.constant 0.353553385 : f32
    %132 = vector.broadcast %cst_58 : f32 to vector<8x8xf32>
    %133 = arith.mulf %131, %132 : vector<8x8xf32>
    %cst_59 = arith.constant dense<0xFF800000> : vector<8xf32>
    %134 = vector.multi_reduction <maximumf>, %133, %cst_59 [1] : vector<8x8xf32> to vector<8xf32>
    %135 = vector.shape_cast %134 : vector<8xf32> to vector<8x1xf32>
    %136 = vector.broadcast %135 : vector<8x1xf32> to vector<8x8xf32>
    %137 = arith.subf %133, %136 : vector<8x8xf32>
    %138 = math.exp %137 : vector<8x8xf32>
    %cst_60 = arith.constant dense<0.000000e+00> : vector<8xf32>
    %139 = vector.multi_reduction <add>, %138, %cst_60 [1] : vector<8x8xf32> to vector<8xf32>
    %140 = vector.shape_cast %139 : vector<8xf32> to vector<8x1xf32>
    %141 = tpu.reciprocal %140 {approx = true} : vector<8x1xf32> -> vector<8x1xf32>
    %142 = vector.broadcast %141 : vector<8x1xf32> to vector<8x8xf32>
    %143 = arith.mulf %138, %142 : vector<8x8xf32>
    %c1_61 = arith.constant 1 : index
    %c2_62 = arith.constant 2 : index
    %c0_63 = arith.constant 0 : index
    %c0_64 = arith.constant 0 : index
    %144 = vector.load %arg7[%c1_61, %c2_62, %c0_63, %c0_64] : memref<2x4x8x8xf32, #tpu.memory_space<vmem>>, vector<1x1x8x8xf32>
    %145 = vector.shape_cast %144 : vector<1x1x8x8xf32> to vector<8x8xf32>
    %146 = vector.shape_cast %143 : vector<8x8xf32> to vector<1x1x8x8xf32>
    tpu.vector_store %arg7[%c1_61, %c2_62, %c0_63, %c0_64], %146 {strides = array<i32>} : memref<2x4x8x8xf32, #tpu.memory_space<vmem>>, vector<1x1x8x8xf32>,
    %cst_65 = arith.constant dense<0.000000e+00> : vector<8x8xf32>
    %147 = tpu.matmul %143, %130, %cst_65 {dimension_numbers = #tpu.dot_dimension_numbers<[1], [0], [0], [1], [0, 0, 1, 1], [], []>} : vector<8x8xf32>, vector<8x8xf32>, vector<8x8xf32> -> vector<8x8xf32>
    %148 = vector.extract_strided_slice %6 {offsets = [8, 24], sizes = [8, 8], strides = [1, 1]} : vector<16x96xf32> to vector<8x8xf32>
    %149 = vector.extract_strided_slice %6 {offsets = [8, 56], sizes = [8, 8], strides = [1, 1]} : vector<16x96xf32> to vector<8x8xf32>
    %150 = vector.extract_strided_slice %6 {offsets = [8, 88], sizes = [8, 8], strides = [1, 1]} : vector<16x96xf32> to vector<8x8xf32>
    %cst_66 = arith.constant dense<0.000000e+00> : vector<8x8xf32>
    %151 = tpu.matmul %148, %149, %cst_66 {dimension_numbers = #tpu.dot_dimension_numbers<[1], [1], [0], [0], [0, 0, 1, 0], [], []>} : vector<8x8xf32>, vector<8x8xf32>, vector<8x8xf32> -> vector<8x8xf32>
    %cst_67 = arith.constant 0.353553385 : f32
    %152 = vector.broadcast %cst_67 : f32 to vector<8x8xf32>
    %153 = arith.mulf %151, %152 : vector<8x8xf32>
    %cst_68 = arith.constant dense<0xFF800000> : vector<8xf32>
    %154 = vector.multi_reduction <maximumf>, %153, %cst_68 [1] : vector<8x8xf32> to vector<8xf32>
    %155 = vector.shape_cast %154 : vector<8xf32> to vector<8x1xf32>
    %156 = vector.broadcast %155 : vector<8x1xf32> to vector<8x8xf32>
    %157 = arith.subf %153, %156 : vector<8x8xf32>
    %158 = math.exp %157 : vector<8x8xf32>
    %cst_69 = arith.constant dense<0.000000e+00> : vector<8xf32>
    %159 = vector.multi_reduction <add>, %158, %cst_69 [1] : vector<8x8xf32> to vector<8xf32>
    %160 = vector.shape_cast %159 : vector<8xf32> to vector<8x1xf32>
    %161 = tpu.reciprocal %160 {approx = true} : vector<8x1xf32> -> vector<8x1xf32>
    %162 = vector.broadcast %161 : vector<8x1xf32> to vector<8x8xf32>
    %163 = arith.mulf %158, %162 : vector<8x8xf32>
    %c1_70 = arith.constant 1 : index
    %c3_71 = arith.constant 3 : index
    %c0_72 = arith.constant 0 : index
    %c0_73 = arith.constant 0 : index
    %164 = vector.load %arg7[%c1_70, %c3_71, %c0_72, %c0_73] : memref<2x4x8x8xf32, #tpu.memory_space<vmem>>, vector<1x1x8x8xf32>
    %165 = vector.shape_cast %164 : vector<1x1x8x8xf32> to vector<8x8xf32>
    %166 = vector.shape_cast %163 : vector<8x8xf32> to vector<1x1x8x8xf32>
    tpu.vector_store %arg7[%c1_70, %c3_71, %c0_72, %c0_73], %166 {strides = array<i32>} : memref<2x4x8x8xf32, #tpu.memory_space<vmem>>, vector<1x1x8x8xf32>,
    %cst_74 = arith.constant dense<0.000000e+00> : vector<8x8xf32>
    %167 = tpu.matmul %163, %150, %cst_74 {dimension_numbers = #tpu.dot_dimension_numbers<[1], [0], [0], [1], [0, 0, 1, 1], [], []>} : vector<8x8xf32>, vector<8x8xf32>, vector<8x8xf32> -> vector<8x8xf32>
    %168 = tpu.concatenate %107, %127, %147, %167 in 1 : vector<8x8xf32>, vector<8x8xf32>, vector<8x8xf32>, vector<8x8xf32> -> vector<8x32xf32>
    %169 = tpu.concatenate %87, %168 in 0 : vector<8x32xf32>, vector<8x32xf32> -> vector<16x32xf32>
    %c0_75 = arith.constant 0 : index
    %c0_76 = arith.constant 0 : index
    %170 = vector.load %arg4[%c0_75, %c0_76] : memref<32x32xf32, #tpu.memory_space<vmem>>, vector<32x32xf32>
    %cst_77 = arith.constant dense<0.000000e+00> : vector<16x32xf32>
    %171 = tpu.matmul %169, %170, %cst_77 {dimension_numbers = #tpu.dot_dimension_numbers<[1], [0], [0], [1], [0, 0, 1, 1], [], []>} : vector<16x32xf32>, vector<32x32xf32>, vector<16x32xf32> -> vector<16x32xf32>
    %c0_78 = arith.constant 0 : index
    %c0_79 = arith.constant 0 : index
    %172 = vector.load %arg5[%c0_78, %c0_79] : memref<1x32xf32, #tpu.memory_space<vmem>>, vector<1x32xf32>
    %173 = vector.broadcast %172 : vector<1x32xf32> to vector<16x32xf32>
    %174 = arith.addf %171, %173 : vector<16x32xf32>
    %175 = vector.shape_cast %174 : vector<16x32xf32> to vector<2x8x32xf32>
    %c0_80 = arith.constant 0 : index
    %c0_81 = arith.constant 0 : index
    %c0_82 = arith.constant 0 : index
    %176 = vector.load %arg6[%c0_80, %c0_81, %c0_82] : memref<2x8x32xf32, #tpu.memory_space<vmem>>, vector<2x8x32xf32>
    tpu.vector_store %arg6[%c0_80, %c0_81, %c0_82], %175 {strides = array<i32>} : memref<2x8x32xf32, #tpu.memory_space<vmem>>, vector<2x8x32xf32>,
    return
  }
  func.func @transform_0(%arg0: i32) -> (i32, i32, i32) {
    %c0_i32 = arith.constant 0 : i32
    %c0_i32_0 = arith.constant 0 : i32
    %c0_i32_1 = arith.constant 0 : i32
    return %arg0, %c0_i32, %c0_i32_0 : i32, i32, i32
  }
  func.func @transform_1(%arg0: i32) -> (i32, i32) {
    %c0_i32 = arith.constant 0 : i32
    %c0_i32_0 = arith.constant 0 : i32
    %c0_i32_1 = arith.constant 0 : i32
    return %c0_i32, %c0_i32_0 : i32, i32
  }
  func.func @transform_2(%arg0: i32) -> (i32, i32) {
    %c0_i32 = arith.constant 0 : i32
    %c0_i32_0 = arith.constant 0 : i32
    %c0_i32_1 = arith.constant 0 : i32
    return %c0_i32, %c0_i32_0 : i32, i32
  }
  func.func @transform_3(%arg0: i32) -> (i32, i32) {
    %c0_i32 = arith.constant 0 : i32
    %c0_i32_0 = arith.constant 0 : i32
    %c0_i32_1 = arith.constant 0 : i32
    return %c0_i32, %c0_i32_0 : i32, i32
  }
  func.func @transform_4(%arg0: i32) -> (i32, i32) {
    %c0_i32 = arith.constant 0 : i32
    %c0_i32_0 = arith.constant 0 : i32
    %c0_i32_1 = arith.constant 0 : i32
    return %c0_i32, %c0_i32_0 : i32, i32
  }
  func.func @transform_5(%arg0: i32) -> (i32, i32, i32) {
    %c0_i32 = arith.constant 0 : i32
    %c0_i32_0 = arith.constant 0 : i32
    %c0_i32_1 = arith.constant 0 : i32
    return %arg0, %c0_i32, %c0_i32_0 : i32, i32, i32
  }
  func.func @transform_6(%arg0: i32) -> (i32, i32, i32, i32) {
    %c0_i32 = arith.constant 0 : i32
    %c0_i32_0 = arith.constant 0 : i32
    %c0_i32_1 = arith.constant 0 : i32
    %c0_i32_2 = arith.constant 0 : i32
    return %arg0, %c0_i32, %c0_i32_0, %c0_i32_1 : i32, i32, i32, i32
  }
}

</mosaic_0001>

<bundles_post_ra>
// kernel: tpu_custom_call.1
= control target key start
LH: loop header
LB: loop body
LE: loop exit
PB: predicated region body
PF: predicated region fallthrough
CT: control target
= control target key end

     0   :  { %12 = vsyncpa [#allocation3], 0  ;;  %s2328_s0 = inlined_call_operand.hbm [shape: f32[2,8,32], index: 0, kind: input, shape index: {}]   ;;  %s2329_s1 = inlined_call_operand.hbm [shape: f32[32,96], index: 1, kind: input, shape index: {}]   ;;  %s2330_s2 = inlined_call_operand.vmem [shape: f32[1,96], index: 2, kind: input, shape index: {}]   ;;  %s2331_s3 = inlined_call_operand.hbm [shape: f32[32,32], index: 3, kind: input, shape index: {}]   ;;  %s2332_s4 = inlined_call_operand.vmem [shape: f32[1,32], index: 4, kind: input, shape index: {}]   ;;  %s2333_s5 = inlined_call_operand.hbm [shape: f32[2,8,32], index: 5, kind: output, shape index: {0}]   ;;  %s2334_s6 = inlined_call_operand.hbm [shape: f32[2,4,8,8], index: 6, kind: output, shape index: {1}]  }
   0x1   :  { %13 = vsyncpa [#allocation6], 0 }
   0x2   :  { %14 = vsyncpa [#allocation4], 0 }
   0x3   :  { %15 = vsyncpa [#allocation10], 0  ;;  %s2026_s21 = smov [#allocation5]   ;;  %s2027_s23 = smov [#allocation2]  }
   0x4   :  { %s33_s22 = sshll.u32 %s2026_s21, 4  ;;  %s21_s24 = sshll.u32 %s2027_s23, 4  ;;  %s34_s22 = int_to_ptr.vmem [resolvable:$true] %s33_s22  ;;  %s2083_s24 = int_to_ptr.vmem [resolvable:$true] %s21_s24 }
   0x5   :  { %s1908_s27 = scalar_lea.hbm %s2329_s1, 512 }
   0x6   :  { %p1909_p0 = scmp.ne.s32.totalorder %s2329_s1, %s1908_s27  ;;  %p1912_p1 = scmp.lt.u32.totalorder %s1908_s27, %s2329_s1 }
   0x8   :  { %p1914_p2 = pnand %p1912_p1, %p1909_p0 }
   0xa   :  { %1917 = shalt.err (!%p1914_p2)
}
   0xb   :  { %s1918_s8 = scalar_lea.vmem %s34_s22, 512  ;;  %p1923_p4 = scmp.lt.s32.totalorder %s34_s22, %s34_s22 }
   0xc   :  { %p1919_p3 = scmp.ne.s32.totalorder %s34_s22, %s1918_s8  ;;  %p1924_p5 = scmp.lt.s32.totalorder %s1918_s8, %s1918_s8 }
   0xe   :  { %p1925_p6 = por %p1924_p5, %p1923_p4 }
  0x10   :  { %p1926_p7 = pnand %p1925_p6, %p1919_p3 }
  0x12   :  { %1929 = shalt.err (!%p1926_p7)
}
  0x13   :  { %s2028_s9 = smov 128   ;;  %s2029_s10 = smov 8  }
  0x14   :  { %39 = dma.hbm_to_vmem [thread:$0]  %s2329_s1, 512, %s34_s22, [#allocation6], %s2028_s9, %s2028_s9, %s2029_s10  }
  0x15   :  { %s1930_s15 = scalar_lea.hbm %s2328_s0, 256 }
  0x16   :  { %p1931_p8 = scmp.ne.s32.totalorder %s2328_s0, %s1930_s15  ;;  %p1934_p9 = scmp.lt.u32.totalorder %s1930_s15, %s2328_s0 }
  0x18   :  { %p1936_p10 = pnand %p1934_p9, %p1931_p8 }
  0x1a   :  { %1939 = shalt.err (!%p1936_p10)
}
  0x1b   :  { %s1940_s20 = scalar_lea.vmem %s2083_s24, 256  ;;  %p1945_p12 = scmp.lt.s32.totalorder %s2083_s24, %s2083_s24 }
  0x1c   :  { %p1941_p11 = scmp.ne.s32.totalorder %s2083_s24, %s1940_s20  ;;  %p1946_p13 = scmp.lt.s32.totalorder %s1940_s20, %s1940_s20 }
  0x1e   :  { %p1947_p0 = por %p1946_p13, %p1945_p12 }
  0x20   :  { %p1948_p1 = pnand %p1947_p0, %p1941_p11 }
  0x22   :  { %1951 = shalt.err (!%p1948_p1)
}
  0x23   :  { %27 = dma.hbm_to_vmem [thread:$0]  %s2328_s0, 256, %s2083_s24, [#allocation3], %s2028_s9, %s2028_s9, %s2029_s10  }
  0x24   :  { %s2030_s22 = smov [#allocation7]   ;;  %s1952_s27 = scalar_lea.hbm %s2331_s3, 512 }
  0x25   :  { %s47_s23 = sshll.u32 %s2030_s22, 4  ;;  %p1953_p2 = scmp.ne.s32.totalorder %s2331_s3, %s1952_s27  ;;  %s48_s23 = int_to_ptr.vmem [resolvable:$true] %s47_s23 }
  0x26   :  { %p1956_p3 = scmp.lt.u32.totalorder %s1952_s27, %s2331_s3 }
  0x28   :  { %p1958_p4 = pnand %p1956_p3, %p1953_p2 }
  0x2a   :  { %1961 = shalt.err (!%p1958_p4)
}
  0x2b   :  { %s1962_s8 = scalar_lea.vmem %s48_s23, 512  ;;  %p1967_p6 = scmp.lt.s32.totalorder %s48_s23, %s48_s23 }
  0x2c   :  { %p1963_p5 = scmp.ne.s32.totalorder %s48_s23, %s1962_s8  ;;  %p1968_p7 = scmp.lt.s32.totalorder %s1962_s8, %s1962_s8 }
  0x2e   :  { %p1969_p8 = por %p1968_p7, %p1967_p6 }
  0x30   :  { %p1970_p9 = pnand %p1969_p8, %p1963_p5 }
  0x32   :  { %1973 = shalt.err (!%p1970_p9)
}
  0x33   :  { %53 = dma.hbm_to_vmem [thread:$0]  %s2331_s3, 512, %s48_s23, [#allocation6], %s2028_s9, %s2028_s9, %s2029_s10  }
  0x34   :  { %2018 = dma.done.wait [#allocation3], 256  }
  0x35   :  { %2019 = vsyncadd [#allocation3], 4294967040 }
  0x36   :  { %2020 = dma.done.wait [#allocation6], 1024  }
  0x37   :  { %2021 = vsyncadd [#allocation6], 4294966272  ;;  %vm78_vm0 = vcmask 261120   ;;  %v67_v0 = vld [vmem:[#allocation5] sm:$0xff]  ;;  %v68_v1 = vld [vmem:[#allocation5 + $0x8] sm:$0xff]  ;;  %v2031_v8 = vmov 0.0  }
  0x38   :  { %v69_v2 = vld [vmem:[#allocation5 + $0x10] sm:$0xff]  ;;  %v1838_v3 = vpack.c.bf16 %v68_v1, %v67_v0  ;;  %v70_v4 = vld [vmem:[#allocation5 + $0x18] sm:$0xff]  ;;  %1747 = vmatprep.subr.mxu1 %v2031_v8  ;;  %vm2032_vm1 = vmmov 0   ;;  %s2033_s12 = smov 64   ;;  %s2034_s13 = smov 96   ;;  %vm163_vm2 = vcmask 64512  }
  0x39   :  { %v65_v5 = vld [vmem:[#allocation2] sm:$0xff]  ;;  %v1842_v6 = vpack.c.bf16 %v70_v4, %v69_v2  ;;  %v66_v7 = vld [vmem:[#allocation2 + $0x8] sm:$0xff]  ;;  %1749 = vmatprep.mubr.msk.f32.mxu1 %vm2032_vm1, %v2031_v8  ;;  %s2035_s14 = smov 88   ;;  %s2036_s15 = smov 120   ;;  %vm844_vm3 = vcmask 130048   ;;  %vm846_vm4 = vcmask 195584  }
  0x3a   :  { %1744 = vmatprep.mubr.msk.f32.mxu0 %vm78_vm0, %v65_v5  ;;  %1839 = vmatprep.subr.bf16.mxu0 %v1838_v3  ;;  %v1662_v9 = vld [vmem:[%s2330_s2] ss:$0 sm:$0xff]  ;;  %s2037_s2 = smov 80   ;;  %s2038_s16 = smov 112  }
  0x3b   :  { %1841 = vmatpush3.bf16.msra.mxu0 %v1838_v3  ;;  %s2039_s17 = smov 104   ;;  %s2040_s18 = smov 72  }
  0x3c   :  { %1843 = vmatprep.subr.bf16.mxu0 %v1842_v6  ;;  %s2041_s19 = smov 48   ;;  %s2042_s20 = smov 56  }
  0x3d   :  { %s2043_s1 = smov 40   ;;  %s2044_s21 = smov 16  }
  0x3e   :  { %s2045_s22 = smov 24   ;;  %s2046_s23 = smov [#allocation9]  }
  0x3f   :  { %1845 = vmatpush3.bf16.msra.mxu0 %v1842_v6  ;;  %s1645_s25 = sshll.u32 %s2046_s23, 4  ;;  %s1646_s25 = int_to_ptr.vmem [resolvable:$true] %s1645_s25 }
  0x40   :  { %1767 = vmatprep.subr.mxu0 %v2031_v8  ;;  %s1974_s26 = scalar_lea.vmem %s1646_s25, 1024  ;;  %p1979_p11 = scmp.lt.s32.totalorder %s1646_s25, %s1646_s25 }
  0x41   :  { %p1975_p10 = scmp.ne.s32.totalorder %s1646_s25, %s1974_s26  ;;  %p1980_p12 = scmp.lt.s32.totalorder %s1974_s26, %s1974_s26 }
  0x42   :  { %1745 = vmatmul.mubr.msk.f32.vlgmr.msra.gmra.mrb[0].mxu0 %vm78_vm0, %v66_v7 }
  0x43   :  { %1769 = vmatprep.mubr.msk.f32.mxu0 %vm2032_vm1, %v2031_v8  ;;  %p1981_p13 = por %p1980_p12, %p1979_p11 }
  0x45   :  { %p1982_p0 = pnand %p1981_p13, %p1975_p10 }
 0x115   :  { %v1746_v10 = vpop.f32.mrb[0].mxu0 }
 0x116   :  { %v2146_v11 = vadd.f32 %v1746_v10, %v1662_v9  ;;  %v151_v12 = vpop.f32.mrb[1].mxu0 }
 0x117   :  { %v2148_v13 = vadd.f32 %v1662_v9, %v151_v12 }
 0x119   :  { %251 = vrot.lane.b32.xlu1 %v2148_v13, %s2033_s12  ;;  %161 = vrot.lane.b32.xlu0 %v2148_v13, %s2034_s13 }
 0x11d   :  { %329 = vrot.lane.b32.xlu1 %v2148_v13, %s2035_s14 }
 0x121   :  { %327 = vrot.lane.b32.xlu1 %v2148_v13, %s2036_s15 }
 0x125   :  { %497 = vrot.lane.b32.xlu1 %v2148_v13, %s2037_s2 }
 0x129   :  { %495 = vrot.lane.b32.xlu1 %v2148_v13, %s2038_s16 }
 0x12d   :  { %663 = vrot.lane.b32.xlu1 %v2148_v13, %s2039_s17 }
 0x18b   :  { %v252_v14 = vpop.permute.xlu1 %251  ;;  %v162_v15 = vpop.permute.xlu0 %161 }
 0x18c   :  { %1748 = vmatpush3.xpose.msk.msra.mxu1 %vm163_vm2, %v162_v15 }
 0x18d   :  { %1752 = vmatprep.subr.mxu1 %v2031_v8 }
 0x18f   :  { %v330_v16 = vpop.permute.xlu1 %329  ;;  %1750 = vmatmul.mubr.msk.f32.vlgmr.msra.gmra.mrb[0].mxu1 %vm163_vm2, %v2148_v13 }
 0x190   :  { %1753 = vmatpush3.msra.mxu1 %v252_v14  ;;  %1754 = vmatprep.mubr.msk.f32.mxu1 %vm2032_vm1, %v2031_v8 }
 0x191   :  { %1757 = vmatprep.subr.mxu1 %v2031_v8 }
 0x193   :  { %v328_v17 = vpop.permute.xlu1 %327 }
 0x197   :  { %v498_v18 = vpop.permute.xlu1 %497 }
 0x198   :  { %1768 = vmatpush3.xpose.msk.msra.mxu0 %vm163_vm2, %v498_v18 }
 0x199   :  { %1777 = vmatprep.subr.mxu0 %v2031_v8 }
 0x19b   :  { %v496_v19 = vpop.permute.xlu1 %495 }
 0x19c   :  { %1770 = vmatmul.mubr.msk.f32.vlgmr.msra.gmra.mrb[2].mxu0 %vm163_vm2, %v496_v19 }
 0x19d   :  { %1779 = vmatprep.mubr.msk.f32.mxu0 %vm2032_vm1, %v2031_v8 }
 0x19f   :  { %v664_v32 = vpop.permute.xlu1 %663 }
 0x262   :  { %v234_v20 = vpop.f32.mrb[0].mxu1 }
 0x263   :  { %v238_v21 = vmul.f32 0.35355338, %v234_v20  ;;  %v1751_v22 = vpop.f32.mrb[1].mxu1 }
 0x265   :  { %v239_v23 = vsel %vm163_vm2, %v238_v21, -inf }
 0x266   :  { %240 = vmax.xlane.f32.xlu0 %v239_v23 }
 0x26f   :  { %v569_v24 = vpop.f32.mrb[2].mxu0 }
 0x270   :  { %v1771_v25 = vpop.f32.mrb[3].mxu0  ;;  %v2180_v26 = vmul.f32 0.35355338, %v569_v24 }
 0x272   :  { %v574_v27 = vsel %vm163_vm2, %v2180_v26, -inf }
 0x27c   :  { %665 = vrot.lane.b32.xlu0 %v2148_v13, %s2040_s18 }
 0x280   :  { %1183 = vrot.lane.b32.xlu0 %v2146_v11, %s2038_s16 }
 0x284   :  { %1351 = vrot.lane.b32.xlu0 %v2146_v11, %s2039_s17 }
 0x2a3   :  { %575 = vmax.xlane.f32.xlu0 %v574_v27 }
 0x2f3   :  { %v241_v28 = vpop.xlane.xlu0 %240 }
 0x2f4   :  { %v242_v29 = vsub.f32 %v238_v21, %v241_v28 }
 0x2f6   :  { %v243_v30 = vmul.f32 1.442695, %v242_v29 }
 0x2f7   :  { %v666_v31 = vpop.permute.xlu0 %665 }
 0x2f8   :  { %1876 = vpow2.f32 %v243_v30  ;;  %1778 = vmatpush3.xpose.msk.msra.mxu0 %vm163_vm2, %v666_v31 }
 0x2f9   :  { %1787 = vmatprep.subr.mxu0 %v2031_v8 }
 0x2fb   :  { %1780 = vmatmul.mubr.msk.f32.vlgmr.msra.gmra.mrb[4].mxu0 %vm163_vm2, %v664_v32  ;;  %v1184_v42 = vpop.permute.xlu0 %1183 }
 0x2fc   :  { %1789 = vmatprep.mubr.msk.f32.mxu0 %vm2032_vm1, %v2031_v8 }
 0x2ff   :  { %v1352_v44 = vpop.permute.xlu0 %1351 }
 0x302   :  { %v1877_v33 = vpop.eup %1876 }
 0x303   :  { %v245_v34 = vsel %vm163_vm2, %v1877_v33, 0.0 }
 0x304   :  { %246 = vadd.xlane.f32.xlu1 %v245_v34 }
 0x315   :  { %849 = vrot.lane.b32.xlu1 %v2146_v11, %s2034_s13 }
 0x319   :  { %1017 = vrot.lane.b32.xlu1 %v2146_v11, %s2035_s14 }
 0x31d   :  { %1015 = vrot.lane.b32.xlu1 %v2146_v11, %s2036_s15 }
 0x321   :  { %1185 = vrot.lane.b32.xlu1 %v2146_v11, %s2037_s2 }
 0x325   :  { %1353 = vrot.lane.b32.xlu1 %v2146_v11, %s2040_s18 }
 0x330   :  { %v576_v49 = vpop.xlane.xlu0 %575 }
 0x331   :  { %v577_v53 = vsub.f32 %v2180_v26, %v576_v49 }
 0x333   :  { %v578_v56 = vmul.f32 1.442695, %v577_v53 }
 0x391   :  { %v247_v35 = vpop.xlane.xlu1 %246 }
 0x392   :  { %1878 = vrcp.f32 %v247_v35 }
 0x393   :  { %1880 = vpow2.f32 %v578_v56 }
 0x395   :  { %v850_v36 = vpop.permute.xlu1 %849 }
 0x396   :  { %1788 = vmatpush3.xpose.msk.msra.mxu0 %vm163_vm2, %v850_v36 }
 0x397   :  { %1797 = vmatprep.subr.mxu0 %v2031_v8 }
 0x399   :  { %v1018_v37 = vpop.permute.xlu1 %1017  ;;  %1790 = vmatmul.mubr.msk.f32.vlgmr.msra.gmra.mrb[6].mxu0 %vm163_vm2, %v2146_v11 }
 0x39a   :  { %1798 = vmatpush3.xpose.msk.msra.mxu0 %vm163_vm2, %v1018_v37  ;;  %1799 = vmatprep.mubr.msk.f32.mxu0 %vm2032_vm1, %v2031_v8 }
 0x39b   :  { %1807 = vmatprep.subr.mxu0 %v2031_v8 }
 0x39c   :  { %v1879_v38 = vpop.eup %1878 }
 0x39d   :  { %v249_v39 = vmul.f32 %v1879_v38, %v1877_v33  ;;  %v1016_v40 = vpop.permute.xlu1 %1015  ;;  %v1881_v15 = vpop.eup %1880 }
 0x39e   :  { %1800 = vmatmul.mubr.msk.f32.vlgmr.msra.gmra.mrb[8].mxu0 %vm163_vm2, %v1016_v40  ;;  %v580_v18 = vsel %vm163_vm2, %v1881_v15, 0.0 }
 0x39f   :  { %250 = vst.msk [vmem:[#allocation9] sm:$0xff] %vm163_vm2, %v249_v39  ;;  %1755 = vmatmul.mubr.msk.f32.vlgmr.msra.gmra.mrb[2].mxu1 %vm163_vm2, %v249_v39  ;;  %1809 = vmatprep.mubr.msk.f32.mxu0 %vm2032_vm1, %v2031_v8 }
 0x3a0   :  { %1758 = vmatpush3.xpose.msk.msra.mxu1 %vm163_vm2, %v330_v16  ;;  %1759 = vmatprep.mubr.msk.f32.mxu1 %vm2032_vm1, %v2031_v8 }
 0x3a1   :  { %v1186_v41 = vpop.permute.xlu1 %1185  ;;  %1762 = vmatprep.subr.mxu1 %v2031_v8 }
 0x3a2   :  { %1808 = vmatpush3.xpose.msk.msra.mxu0 %vm163_vm2, %v1186_v41 }
 0x3a3   :  { %1760 = vmatmul.mubr.msk.f32.vlgmr.msra.gmra.mrb[4].mxu1 %vm163_vm2, %v328_v17  ;;  %1817 = vmatprep.subr.mxu0 %v2031_v8 }
 0x3a4   :  { %1764 = vmatprep.mubr.msk.f32.mxu1 %vm2032_vm1, %v2031_v8 }
 0x3a5   :  { %v1354_v43 = vpop.permute.xlu1 %1353  ;;  %1810 = vmatmul.mubr.msk.f32.vlgmr.msra.gmra.mrb[10].mxu0 %vm163_vm2, %v1184_v42 }
 0x3a6   :  { %1818 = vmatpush3.xpose.msk.msra.mxu0 %vm163_vm2, %v1354_v43  ;;  %1819 = vmatprep.mubr.msk.f32.mxu0 %vm2032_vm1, %v2031_v8 }
 0x3a9   :  { %1820 = vmatmul.mubr.msk.f32.vlgmr.msra.gmra.mrb[12].mxu0 %vm163_vm2, %v1352_v44 }
 0x3ce   :  { %v737_v45 = vpop.f32.mrb[4].mxu0 }
 0x3cf   :  { %v741_v46 = vmul.f32 0.35355338, %v737_v45  ;;  %v1781_v47 = vpop.f32.mrb[5].mxu0 }
 0x3d1   :  { %v742_v48 = vsel %vm163_vm2, %v741_v46, -inf }
 0x3d2   :  { %743 = vmax.xlane.f32.xlu0 %v742_v48 }
 0x45f   :  { %v744_v51 = vpop.xlane.xlu0 %743 }
 0x460   :  { %v745_v54 = vsub.f32 %v741_v46, %v744_v51 }
 0x462   :  { %v746_v61 = vmul.f32 1.442695, %v745_v54 }
 0x464   :  { %1882 = vpow2.f32 %v746_v61 }
 0x46c   :  { %v921_v50 = vpop.f32.mrb[6].mxu0 }
 0x46d   :  { %v1791_v52 = vpop.f32.mrb[7].mxu0  ;;  %v925_v3 = vmul.f32 0.35355338, %v921_v50 }
 0x46e   :  { %v1883_v17 = vpop.eup %1882 }
 0x46f   :  { %v926_v12 = vsel %vm163_vm2, %v925_v3, -inf  ;;  %v748_v19 = vsel %vm163_vm2, %v1883_v17, 0.0 }
 0x471   :  { %v1089_v55 = vpop.f32.mrb[8].mxu0 }
 0x472   :  { %v1093_v57 = vmul.f32 0.35355338, %v1089_v55  ;;  %v2228_v58 = vpop.f32.mrb[2].mxu1  ;;  %v1801_v59 = vpop.f32.mrb[9].mxu0 }
 0x473   :  { %v1756_v60 = vpop.f32.mrb[3].mxu1 }
 0x474   :  { %v1094_v62 = vsel %vm163_vm2, %v1093_v57, -inf }
 0x475   :  { %1095 = vmax.xlane.f32.xlu0 %v1094_v62 }
 0x476   :  { %v401_v63 = vpop.f32.mrb[4].mxu1 }
 0x477   :  { %v2231_v0 = vmul.f32 0.35355338, %v401_v63  ;;  %v1761_v1 = vpop.f32.mrb[5].mxu1 }
 0x478   :  { %v1257_v2 = vpop.f32.mrb[10].mxu0 }
 0x479   :  { %v1811_v4 = vpop.f32.mrb[11].mxu0  ;;  %v406_v5 = vsel %vm163_vm2, %v2231_v0, -inf  ;;  %v1261_v7 = vmul.f32 0.35355338, %v1257_v2 }
 0x47a   :  { %407 = vmax.xlane.f32.xlu1 %v406_v5 }
 0x47b   :  { %v1262_v16 = vsel %vm163_vm2, %v1261_v7, -inf }
 0x47c   :  { %v1425_v6 = vpop.f32.mrb[12].mxu0 }
 0x47d   :  { %v1429_v9 = vmul.f32 0.35355338, %v1425_v6  ;;  %v1821_v10 = vpop.f32.mrb[13].mxu0 }
 0x47e   :  { %927 = vmax.xlane.f32.xlu1 %v926_v12  ;;  %v1534_v12 = vld [vmem:[#allocation7] sm:$0xff] }
 0x47f   :  { %v1430_v14 = vsel %vm163_vm2, %v1429_v9, -inf }
 0x480   :  { %1431 = vmax.xlane.f32.xlu0 %v1430_v14  ;;  %v1535_v14 = vld [vmem:[#allocation7 + $0x8] sm:$0xff] }
 0x482   :  { %1263 = vmax.xlane.f32.xlu1 %v1262_v16  ;;  %v1846_v16 = vpack.c.bf16 %v1535_v14, %v1534_v12 }
 0x484   :  { %581 = vadd.xlane.f32.xlu0 %v580_v18  ;;  %1847 = vmatprep.subr.bf16.mxu0 %v1846_v16  ;;  %v1536_v18 = vld [vmem:[#allocation7 + $0x10] sm:$0xff] }
 0x485   :  { %1849 = vmatpush3.bf16.msra.mxu0 %v1846_v16 }
 0x486   :  { %749 = vadd.xlane.f32.xlu1 %v748_v19  ;;  %v1537_v19 = vld [vmem:[#allocation7 + $0x18] sm:$0xff] }
 0x502   :  { %v1096_v20 = vpop.xlane.xlu0 %1095 }
 0x503   :  { %v1097_v21 = vsub.f32 %v1093_v57, %v1096_v20 }
 0x505   :  { %v1098_v22 = vmul.f32 1.442695, %v1097_v21  ;;  %v1850_v21 = vpack.c.bf16 %v1537_v19, %v1536_v18 }
 0x507   :  { %1884 = vpow2.f32 %v1098_v22  ;;  %v408_v23 = vpop.xlane.xlu1 %407  ;;  %1851 = vmatprep.subr.bf16.mxu0 %v1850_v21 }
 0x508   :  { %v409_v47 = vsub.f32 %v2231_v0, %v408_v23  ;;  %1853 = vmatpush3.bf16.msra.mxu0 %v1850_v21 }
 0x50a   :  { %v410_v48 = vmul.f32 1.442695, %v409_v47 }
 0x50b   :  { %v928_v24 = vpop.xlane.xlu1 %927 }
 0x50c   :  { %v929_v25 = vsub.f32 %v925_v3, %v928_v24 }
 0x50d   :  { %v1432_v26 = vpop.xlane.xlu0 %1431 }
 0x50e   :  { %v930_v27 = vmul.f32 1.442695, %v929_v25  ;;  %v1433_v28 = vsub.f32 %v1429_v9, %v1432_v26 }
 0x50f   :  { %v1264_v29 = vpop.xlane.xlu1 %1263 }
 0x510   :  { %1886 = vpow2.f32 %v930_v27  ;;  %v1434_v30 = vmul.f32 1.442695, %v1433_v28  ;;  %v1265_v31 = vsub.f32 %v1261_v7, %v1264_v29 }
 0x511   :  { %v1885_v32 = vpop.eup %1884  ;;  %v582_v33 = vpop.xlane.xlu0 %581 }
 0x512   :  { %1888 = vpow2.f32 %v1434_v30  ;;  %v1266_v34 = vmul.f32 1.442695, %v1265_v31  ;;  %v1100_v35 = vsel %vm163_vm2, %v1885_v32, 0.0 }
 0x513   :  { %1890 = vrcp.f32 %v582_v33  ;;  %1101 = vadd.xlane.f32.xlu1 %v1100_v35  ;;  %v750_v36 = vpop.xlane.xlu1 %749 }
 0x514   :  { %1892 = vpow2.f32 %v1266_v34 }
 0x515   :  { %1894 = vrcp.f32 %v750_v36 }
 0x516   :  { %1896 = vpow2.f32 %v410_v48 }
 0x51a   :  { %v1887_v37 = vpop.eup %1886 }
 0x51b   :  { %v932_v38 = vsel %vm163_vm2, %v1887_v37, 0.0 }
 0x51c   :  { %v1889_v39 = vpop.eup %1888  ;;  %933 = vadd.xlane.f32.xlu0 %v932_v38 }
 0x51d   :  { %v1891_v40 = vpop.eup %1890  ;;  %v1436_v41 = vsel %vm163_vm2, %v1889_v39, 0.0 }
 0x51e   :  { %v1893_v42 = vpop.eup %1892  ;;  %v584_v43 = vmul.f32 %v1891_v40, %v1881_v15  ;;  %1437 = vadd.xlane.f32.xlu1 %v1436_v41 }
 0x51f   :  { %v1895_v44 = vpop.eup %1894  ;;  %v1268_v45 = vsel %vm163_vm2, %v1893_v42, 0.0 }
 0x520   :  { %586 = vst.msk [vmem:[#allocation9 + $0x10] sm:$0xff] %vm163_vm2, %v584_v43  ;;  %v752_v46 = vmul.f32 %v1895_v44, %v1883_v17  ;;  %1269 = vadd.xlane.f32.xlu0 %v1268_v45  ;;  %v1897_v49 = vpop.eup %1896 }
 0x521   :  { %v412_v50 = vsel %vm163_vm2, %v1897_v49, 0.0 }
 0x522   :  { %754 = vst.msk [vmem:[#allocation9 + $0x18] sm:$0xff] %vm163_vm2, %v752_v46 }
 0x52f   :  { %587 = vrot.lane.b32.xlu1 %v2148_v13, %s2041_s19 }
 0x536   :  { %419 = vrot.lane.b32.xlu0 %v2148_v13, %s2042_s20 }
 0x53a   :  { %939 = vrot.lane.b32.xlu0 %v2146_v11, %s2033_s12 }
 0x53e   :  { %1275 = vrot.lane.b32.xlu0 %v2146_v11, %s2041_s19 }
 0x553   :  { %413 = vadd.xlane.f32.xlu1 %v412_v50 }
 0x564   :  { %755 = vrot.lane.b32.xlu1 %v2148_v13, %s2043_s1 }
 0x568   :  { %1107 = vrot.lane.b32.xlu1 %v2146_v11, %s2042_s20 }
 0x56c   :  { %1443 = vrot.lane.b32.xlu1 %v2146_v11, %s2043_s1 }
 0x5a0   :  { %v1102_v51 = vpop.xlane.xlu1 %1101 }
 0x5a1   :  { %1898 = vrcp.f32 %v1102_v51 }
 0x5a9   :  { %v934_v52 = vpop.xlane.xlu0 %933 }
 0x5aa   :  { %1900 = vrcp.f32 %v934_v52 }
 0x5ab   :  { %v1899_v53 = vpop.eup %1898  ;;  %v1438_v54 = vpop.xlane.xlu1 %1437 }
 0x5ac   :  { %v1104_v55 = vmul.f32 %v1899_v53, %v1885_v32  ;;  %1902 = vrcp.f32 %v1438_v54 }
 0x5ad   :  { %v1270_v56 = vpop.xlane.xlu0 %1269 }
 0x5ae   :  { %1106 = vst.msk [vmem:[#allocation9 + $0x28] sm:$0xff] %vm163_vm2, %v1104_v55  ;;  %1904 = vrcp.f32 %v1270_v56 }
 0x5af   :  { %v588_v63 = vpop.permute.xlu1 %587 }
 0x5b1   :  { %v420_v57 = vpop.permute.xlu0 %419 }
 0x5b2   :  { %1763 = vmatpush3.msra.mxu1 %v420_v57 }
 0x5b3   :  { %1772 = vmatprep.subr.mxu1 %v2031_v8 }
 0x5b4   :  { %v1901_v13 = vpop.eup %1900 }
 0x5b5   :  { %v936_v59 = vmul.f32 %v1901_v13, %v1887_v37  ;;  %v940_v4 = vpop.permute.xlu0 %939 }
 0x5b6   :  { %v1903_v60 = vpop.eup %1902 }
 0x5b7   :  { %938 = vst.msk [vmem:[#allocation9 + $0x20] sm:$0xff] %vm163_vm2, %v936_v59  ;;  %v1440_v11 = vmul.f32 %v1903_v60, %v1889_v39 }
 0x5b8   :  { %v1905_v61 = vpop.eup %1904 }
 0x5b9   :  { %1442 = vst.msk [vmem:[#allocation9 + $0x38] sm:$0xff] %vm163_vm2, %v1440_v11  ;;  %v1272_v62 = vmul.f32 %v1905_v61, %v1893_v42  ;;  %v1276_v6 = vpop.permute.xlu0 %1275 }
 0x5bb   :  { %1274 = vst.msk [vmem:[#allocation9 + $0x30] sm:$0xff] %vm163_vm2, %v1272_v62 }
 0x5e0   :  { %v414_v0 = vpop.xlane.xlu1 %413 }
 0x5e1   :  { %1906 = vrcp.f32 %v414_v0 }
 0x5e4   :  { %v756_v3 = vpop.permute.xlu1 %755 }
 0x5e8   :  { %v1108_v5 = vpop.permute.xlu1 %1107 }
 0x5eb   :  { %v1907_v1 = vpop.eup %1906 }
 0x5ec   :  { %v416_v2 = vmul.f32 %v1907_v1, %v1897_v49  ;;  %v1444_v7 = vpop.permute.xlu1 %1443 }
 0x5ee   :  { %418 = vst.msk [vmem:[#allocation9 + $0x8] sm:$0xff] %vm163_vm2, %v416_v2  ;;  %1765 = vmatmul.mubr.msk.f32.vlgmr.msra.gmra.mrb[6].mxu1 %vm163_vm2, %v416_v2 }
 0x5ef   :  { %1773 = vmatpush3.msra.mxu1 %v588_v63  ;;  %1774 = vmatprep.mubr.msk.f32.mxu1 %vm2032_vm1, %v2031_v8 }
 0x5f0   :  { %1782 = vmatprep.subr.mxu1 %v2031_v8 }
 0x5f2   :  { %1775 = vmatmul.mubr.msk.f32.vlgmr.msra.gmra.mrb[8].mxu1 %vm163_vm2, %v584_v43 }
 0x5f3   :  { %1783 = vmatpush3.msra.mxu1 %v756_v3  ;;  %1784 = vmatprep.mubr.msk.f32.mxu1 %vm2032_vm1, %v2031_v8 }
 0x5f4   :  { %1792 = vmatprep.subr.mxu1 %v2031_v8 }
 0x5f6   :  { %1785 = vmatmul.mubr.msk.f32.vlgmr.msra.gmra.mrb[10].mxu1 %vm163_vm2, %v752_v46 }
 0x5f7   :  { %1793 = vmatpush3.msra.mxu1 %v940_v4  ;;  %1794 = vmatprep.mubr.msk.f32.mxu1 %vm2032_vm1, %v2031_v8 }
 0x5f8   :  { %1802 = vmatprep.subr.mxu1 %v2031_v8 }
 0x5fa   :  { %1795 = vmatmul.mubr.msk.f32.vlgmr.msra.gmra.mrb[12].mxu1 %vm163_vm2, %v936_v59 }
 0x5fb   :  { %1803 = vmatpush3.msra.mxu1 %v1108_v5  ;;  %1804 = vmatprep.mubr.msk.f32.mxu1 %vm2032_vm1, %v2031_v8 }
 0x5fc   :  { %1812 = vmatprep.subr.mxu1 %v2031_v8 }
 0x5fe   :  { %1805 = vmatmul.mubr.msk.f32.vlgmr.msra.gmra.mrb[14].mxu1 %vm163_vm2, %v1104_v55 }
 0x5ff   :  { %1813 = vmatpush3.msra.mxu1 %v1276_v6  ;;  %1814 = vmatprep.mubr.msk.f32.mxu1 %vm2032_vm1, %v2031_v8 }
 0x600   :  { %1822 = vmatprep.subr.mxu1 %v2031_v8 }
 0x602   :  { %1815 = vmatmul.mubr.msk.f32.vlgmr.msra.gmra.mrb[16].mxu1 %vm163_vm2, %v1272_v62 }
 0x603   :  { %1823 = vmatpush3.msra.mxu1 %v1444_v7  ;;  %1824 = vmatprep.mubr.msk.f32.mxu1 %vm2032_vm1, %v2031_v8 }
 0x606   :  { %1825 = vmatmul.mubr.msk.f32.vlgmr.msra.gmra.mrb[18].mxu1 %vm163_vm2, %v1440_v11 }
 0x6c1   :  { %v491_v9 = vpop.f32.mrb[6].mxu1 }
 0x6c2   :  { %832 = vrot.lane.b32.xlu0 %v491_v9, %s2029_s10  ;;  %v1766_v10 = vpop.f32.mrb[7].mxu1 }
 0x6c5   :  { %v659_v15 = vpop.f32.mrb[8].mxu1 }
 0x6c6   :  { %836 = vrot.lane.b32.xlu1 %v659_v15, %s2044_s21  ;;  %v1776_v17 = vpop.f32.mrb[9].mxu1 }
 0x6c9   :  { %v827_v20 = vpop.f32.mrb[10].mxu1 }
 0x6ca   :  { %840 = vrot.lane.b32.xlu1 %v827_v20, %s2045_s22  ;;  %v1786_v8 = vpop.f32.mrb[11].mxu1 }
 0x6cd   :  { %v1011_v22 = vpop.f32.mrb[12].mxu1 }
 0x6ce   :  { %v1796_v23 = vpop.f32.mrb[13].mxu1 }
 0x6d1   :  { %v1179_v24 = vpop.f32.mrb[14].mxu1 }
 0x6d2   :  { %1520 = vrot.lane.b32.xlu0 %v1179_v24, %s2029_s10  ;;  %v1806_v25 = vpop.f32.mrb[15].mxu1 }
 0x6d5   :  { %v1347_v26 = vpop.f32.mrb[16].mxu1 }
 0x6d6   :  { %1524 = vrot.lane.b32.xlu0 %v1347_v26, %s2044_s21  ;;  %v1816_v27 = vpop.f32.mrb[17].mxu1 }
 0x6d9   :  { %v1515_v28 = vpop.f32.mrb[18].mxu1 }
 0x6da   :  { %1528 = vrot.lane.b32.xlu1 %v1515_v28, %s2045_s22  ;;  %v1826_v29 = vpop.f32.mrb[19].mxu1 }
 0x734   :  { %v833_v30 = vpop.permute.xlu0 %832 }
 0x735   :  { %v843_v32 = vsel %vm163_vm2, %v2228_v58, %v833_v30 }
 0x738   :  { %v837_v31 = vpop.permute.xlu1 %836 }
 0x739   :  { %v845_v33 = vsel %vm844_vm3, %v843_v32, %v837_v31 }
 0x73c   :  { %v841_v34 = vpop.permute.xlu1 %840 }
 0x73d   :  { %v847_v35 = vsel %vm846_vm4, %v845_v33, %v841_v34 }
 0x73e   :  { %1835 = vmatprep.mubr.msk.f32.mxu0 %vm78_vm0, %v847_v35 }
 0x744   :  { %v1521_v36 = vpop.permute.xlu0 %1520 }
 0x745   :  { %v1531_v38 = vsel %vm163_vm2, %v1011_v22, %v1521_v36 }
 0x748   :  { %v1525_v37 = vpop.permute.xlu0 %1524 }
 0x749   :  { %v1532_v39 = vsel %vm844_vm3, %v1531_v38, %v1525_v37 }
 0x74c   :  { %v1529_v40 = vpop.permute.xlu1 %1528 }
 0x74d   :  { %v1533_v41 = vsel %vm846_vm4, %v1532_v39, %v1529_v40 }
 0x74e   :  { %1836 = vmatmul.mubr.msk.f32.vlgmr.msra.gmra.mrb[14].mxu0 %vm78_vm0, %v1533_v41 }
 0x74f   :  { %1985 = shalt.err (!%p1982_p0)
}
 0x750   :  { %s1986_s29 = scalar_lea.hbm %s2334_s6, 1024 }
 0x751   :  { %p1987_p1 = scmp.ne.s32.totalorder %s2334_s6, %s1986_s29  ;;  %p1990_p2 = scmp.lt.u32.totalorder %s1986_s29, %s2334_s6 }
 0x753   :  { %p1992_p3 = pnand %p1990_p2, %p1987_p1 }
 0x755   :  { %1995 = shalt.err (!%p1992_p3)
}
 0x756   :  { %1651 = dma.vmem_to_hbm [thread:$0]  %s1646_s25, 1024, %s2334_s6, [#allocation10], %s2028_s9, %s2028_s9, %s2029_s10  }
 0x757   :  { %v1689_v58 = vld [vmem:[%s2332_s4] ss:$0 sm:$0xff]  ;;  %s2047_s13 = smov [#allocation8]  }
 0x758   :  { %s1633_s14 = sshll.u32 %s2047_s13, 4  ;;  %s1634_s14 = int_to_ptr.vmem [resolvable:$true] %s1633_s14 }
 0x759   :  { %s1996_s15 = scalar_lea.vmem %s1634_s14, 256  ;;  %p2001_p5 = scmp.lt.s32.totalorder %s1634_s14, %s1634_s14 }
 0x75a   :  { %p1997_p4 = scmp.ne.s32.totalorder %s1634_s14, %s1996_s15  ;;  %p2002_p6 = scmp.lt.s32.totalorder %s1996_s15, %s1996_s15 }
 0x75c   :  { %p2003_p7 = por %p2002_p6, %p2001_p5 }
 0x75e   :  { %p2004_p8 = pnand %p2003_p7, %p1997_p4 }
 0x821   :  { %v1837_v42 = vpop.f32.mrb[14].mxu0 }
 0x822   :  { %v1623_v43 = vadd.f32 %v1837_v42, %v1689_v58  ;;  %v1617_v44 = vpop.f32.mrb[15].mxu0 }
 0x823   :  { %v1618_v45 = vadd.f32 %v1689_v58, %v1617_v44 }
 0x824   :  { %1627 = vst.msk [vmem:[#allocation8 + $0x8] sm:$0xff] %vm78_vm0, %v1623_v43 }
 0x825   :  { %1626 = vst.msk [vmem:[#allocation8] sm:$0xff] %vm78_vm0, %v1618_v45 }
 0x826   :  { %2007 = shalt.err (!%p2004_p8)
}
 0x827   :  { %s2008_s2 = scalar_lea.hbm %s2333_s5, 256 }
 0x828   :  { %p2009_p9 = scmp.ne.s32.totalorder %s2333_s5, %s2008_s2  ;;  %p2012_p10 = scmp.lt.u32.totalorder %s2008_s2, %s2333_s5 }
 0x82a   :  { %p2014_p11 = pnand %p2012_p10, %p2009_p9 }
 0x82c   :  { %2017 = shalt.err (!%p2014_p11)
}
 0x82d   :  { %1639 = dma.vmem_to_hbm [thread:$0]  %s1634_s14, 256, %s2333_s5, [#allocation4], %s2028_s9, %s2028_s9, %s2029_s10  }
 0x82e   :  { %2022 = dma.done.wait [#allocation4], 256  }
 0x82f   :  { %2023 = vsyncadd [#allocation4], 4294967040 }
 0x830   :  { %2024 = dma.done.wait [#allocation10], 1024  }
 0x831   :  { %2025 = vsyncadd [#allocation10], 4294966272 }
 0x832   :  { %1658 = vsyncpa [#allocation3], 1 }
 0x833   :  { %1659 = vsyncpa [#allocation6], 1 }
 0x834   :  { %1660 = vsyncpa [#allocation4], 1 }
 0x835   :  { %1661 = vsyncpa [#allocation10], 1 }

</bundles_post_ra>
